<compile_context>
chip_gen: v7x
topology: tpu7x:2x2x1
jax: 0.10.0
libtpu: 0.0.40
codegen_flags: <defaults>
</compile_context>

<pallas_src>
import functools

import jax
import jax.numpy as jnp
from jax import lax
from jax.experimental import pallas as pl
from jax.experimental.pallas import tpu as pltpu


def _round_up(x, m):
    return ((x + m - 1) // m) * m


# ---------------------------------------------------------------------------
# Kernel
# ---------------------------------------------------------------------------
def _noisy_linear_kernel(x_ref, wmu_ref, wsig_ref, weps_ref, b_ref, o_ref, w_sc):
    # grid = (out-feature tiles [parallel], batch tiles [arbitrary, fastest])
    i = pl.program_id(1)  # batch tile index

    # Build the noisy weight tile once per out-feature tile and keep it in VMEM
    # scratch for all subsequent batch tiles. The mu/sigma/eps blocks are constant
    # over the inner batch axis, so Pallas does not re-DMA them either.
    @pl.when(i == 0)
    def _():
        w = (wmu_ref[...].astype(jnp.float32)
             + wsig_ref[...].astype(jnp.float32) * weps_ref[...].astype(jnp.float32))
        w_sc[...] = w.astype(jnp.bfloat16)          # bf16 stationary RHS for the MXU

    # (bm, K_pad) . (K_pad, tn) -> (bm, tn); NN contraction, no transpose needed.
    acc = lax.dot_general(
        x_ref[...], w_sc[...],
        dimension_numbers=(((1,), (0,)), ((), ())),
        preferred_element_type=jnp.float32)
    o_ref[...] = (acc + b_ref[...]).astype(o_ref.dtype)


# ---------------------------------------------------------------------------
# Wrapper
# ---------------------------------------------------------------------------
def _vmem_need_bytes(bm, tn, K_pad, out_itemsize):
    w_in = 3 * K_pad * tn * 2          # mu / sigma / eps tiles (bf16)
    x_in = bm * K_pad * 2              # x tile (bf16)
    b_in = tn * 4                      # bias tile (f32)
    out = bm * tn * out_itemsize
    scratch = K_pad * tn * 2           # noisy-weight scratch (bf16)
    return 2 * (w_in + x_in + b_in + out) + scratch   # double-buffered pipeline


def noisy_linear(x, weight_mu, weight_sigma, bias_mu, bias_sigma, seed, *,
                 bm=None, tn=None):
    """y = x @ (weight_mu + weight_sigma*eps_w).T + (bias_mu + bias_sigma*eps_b),
    eps ~ N(0,1) drawn from `seed` (fresh, deterministic draw per call)."""
    B, K = x.shape
    N, K2 = weight_mu.shape
    assert K2 == K

    f32, bf16 = jnp.float32, jnp.bfloat16
    K_pad = _round_up(K, 128)
    N_pad = _round_up(N, 128)
    out_itemsize = jnp.dtype(x.dtype).itemsize

    # ----- tile selection (VMEM-budget & megacore aware) -----
    try:
        vmem_cap = pltpu.get_tpu_info().vmem_capacity_bytes   # 128 MiB v5e/v6e, 64 MiB v7x
    except Exception:
        vmem_cap = 64 << 20                                   # v7x-safe fallback
    budget = (vmem_cap * 3) // 4                              # headroom for Mosaic scratch

    if tn is None:
        tn = 512 if N_pad % 512 == 0 else (256 if N_pad % 256 == 0 else 128)
    # >=2 out-feature tiles when possible so v7x's second TensorCore is not idle.
    while tn > 128 and N_pad // tn < 2:
        tn //= 2
    assert N_pad % tn == 0 and tn % 128 == 0

    if bm is None:
        bm = min(256, _round_up(B, 8))
    bm = _round_up(bm, 8)

    while tn > 128 and _vmem_need_bytes(bm, tn, K_pad, out_itemsize) > budget:
        tn //= 2
    while bm > 8 and _vmem_need_bytes(bm, tn, K_pad, out_itemsize) > budget:
        bm = _round_up(bm // 2, 8)
    B_pad = _round_up(B, bm)

    need = _vmem_need_bytes(bm, tn, K_pad, out_itemsize)
    vmem_limit = int(min(budget, max(need + (8 << 20), 32 << 20)))

    # ----- noise (fresh per call, deterministic per seed) -----
    key = jax.random.PRNGKey(seed)
    k_w, k_b = jax.random.split(key)
    weight_eps = jax.random.normal(k_w, (N, K), f32)
    bias_eps = jax.random.normal(k_b, (N,), f32)

    # ----- pad / layout / cast (wrapper-side plumbing) -----
    def pad2(a, rows, cols, dtype):
        pr, pc = rows - a.shape[0], cols - a.shape[1]
        if pr or pc:
            a = jnp.pad(a, ((0, pr), (0, pc)))
        return a.astype(dtype)

    xp = pad2(x, B_pad, K_pad, bf16)                              # (B_pad, K_pad) bf16
    wmuT = pad2(weight_mu.T, K_pad, N_pad, bf16)                  # (K_pad, N_pad) bf16
    wsigT = pad2(weight_sigma.T, K_pad, N_pad, bf16)              # zero sigma in padding
    wepsT = pad2(weight_eps.T, K_pad, N_pad, bf16)
    bias = (bias_mu.astype(f32) + bias_sigma.astype(f32) * bias_eps).reshape(1, N)
    bias = pad2(bias, 1, N_pad, f32)                              # (1, N_pad) f32

    nn, nb = N_pad // tn, B_pad // bm          # out-feature tiles outer, batch tiles inner

    out = pl.pallas_call(
        _noisy_linear_kernel,
        out_shape=jax.ShapeDtypeStruct((B_pad, N_pad), x.dtype),
        grid_spec=pltpu.PrefetchScalarGridSpec(
            num_scalar_prefetch=0,
            grid=(nn, nb),
            in_specs=[
                pl.BlockSpec((bm, K_pad), lambda j, i: (i, 0)),   # x          (bf16)
                pl.BlockSpec((K_pad, tn), lambda j, i: (0, j)),   # weight_mu  (bf16, T)
                pl.BlockSpec((K_pad, tn), lambda j, i: (0, j)),   # weight_sig (bf16, T)
                pl.BlockSpec((K_pad, tn), lambda j, i: (0, j)),   # weight_eps (bf16, T)
                pl.BlockSpec((1, tn),     lambda j, i: (0, j)),   # noisy bias (f32)
            ],
            out_specs=pl.BlockSpec((bm, tn), lambda j, i: (i, j)),
            scratch_shapes=[
                pltpu.VMEM((K_pad, tn), jnp.bfloat16),            # noisy weight tile
            ],
        ),
        compiler_params=pltpu.CompilerParams(
            dimension_semantics=("parallel", "arbitrary"),
            vmem_limit_bytes=vmem_limit,
        ),
    )(xp, wmuT, wsigT, wepsT, bias)

    return out[:B, :N]


def init_noisy_linear_params(key, in_features, out_features, sigma_init=0.5):
    """Deterministic re-implementation of NoisyLinear.reset_parameters."""
    k_wmu, k_bmu = jax.random.split(key)
    mu_range = 1.0 / jnp.sqrt(float(in_features))
    weight_mu = jax.random.uniform(
        k_wmu, (out_features, in_features), jnp.float32, -mu_range, mu_range)
    weight_sigma = jnp.full((out_features, in_features),
                            sigma_init / jnp.sqrt(float(in_features)), jnp.float32)
    bias_mu = jax.random.uniform(
        k_bmu, (out_features,), jnp.float32, -mu_range, mu_range)
    bias_sigma = jnp.full((out_features,),
                          sigma_init / jnp.sqrt(float(out_features)), jnp.float32)
    return weight_mu, weight_sigma, bias_mu, bias_sigma


if __name__ == "__main__":
    # Small, deliberately non-(8,128)-aligned shapes to exercise padding + tiling.
    B, in_features, out_features = 16, 48, 160

    key = jax.random.PRNGKey(0)
    k_param, k_x = jax.random.split(key)
    weight_mu, weight_sigma, bias_mu, bias_sigma = init_noisy_linear_params(
        k_param, in_features, out_features, sigma_init=0.5)
    x = jax.random.normal(k_x, (B, in_features), jnp.float32)

    # bm=8 is ONLY to exercise the per-out-tile weight hoist across 2 batch tiles in
    # this tiny correctness test; the default bm is used in real workloads.
    run = functools.partial(noisy_linear, bm=8)

    # 1) sigma == 0: noise contributes nothing -> must match a plain linear layer
    #    (reference uses the same bf16-operand / f32-accumulate recipe).
    y_mu = jax.block_until_ready(
        run(x, weight_mu, jnp.zeros_like(weight_sigma),
            bias_mu, jnp.zeros_like(bias_sigma), seed=123))
    y_mu_ref = jnp.dot(x.astype(jnp.bfloat16), weight_mu.astype(jnp.bfloat16).T,
                       preferred_element_type=jnp.float32) + bias_mu
    assert y_mu.shape == (B, out_features)
    assert jnp.allclose(y_mu, y_mu_ref, atol=1e-2, rtol=1e-2)

    # 2) noisy forward: deterministic per seed, different across seeds, finite,
    #    and with the noise magnitude predicted by the NoisyLinear model.
    y1 = jax.block_until_ready(run(x, weight_mu, weight_sigma, bias_mu, bias_sigma, seed=7))
    y2 = jax.block_until_ready(run(x, weight_mu, weight_sigma, bias_mu, bias_sigma, seed=7))
    y3 = jax.block_until_ready(run(x, weight_mu, weight_sigma, bias_mu, bias_sigma, seed=8))
    assert jnp.allclose(y1, y2)            # same seed  -> identical noise
    assert not jnp.allclose(y1, y3)        # new seed   -> fresh noise
    assert bool(jnp.all(jnp.isfinite(y1)))

    diff = y1 - y_mu                       # = x @ (sigma_w*eps_w).T + sigma_b*eps_b
    expected_var = (x ** 2) @ (weight_sigma ** 2).T + bias_sigma ** 2
    ratio = float(jnp.sqrt(jnp.mean(diff ** 2) / jnp.mean(expected_var)))
    assert 0.5 < ratio < 2.0, ratio

    print("KERNEL_OK")
</pallas_src>

<mosaic_0001>
module attributes {stable_mosaic.version = 11 : i64} {
  func.func @_noisy_linear_kernel(%arg0: i32, %arg1: i32, %arg2: memref<8x128xbf16, #tpu.memory_space<vmem>>, %arg3: memref<128x128xbf16, #tpu.memory_space<vmem>>, %arg4: memref<128x128xbf16, #tpu.memory_space<vmem>>, %arg5: memref<128x128xbf16, #tpu.memory_space<vmem>>, %arg6: memref<1x128xf32, #tpu.memory_space<vmem>>, %arg7: memref<8x128xf32, #tpu.memory_space<vmem>>, %arg8: memref<128x128xbf16, #tpu.memory_space<vmem>>) attributes {dimension_semantics = [#tpu.dimension_semantics<parallel>, #tpu.dimension_semantics<arbitrary>], iteration_bounds = array<i64: 2, 2>, scalar_prefetch = 0 : i64, scratch_operands = 1 : i64, tpu.core_type = #tpu.core_type<tc>, window_params = [{transform_indices = @transform_0, window_bounds = array<i64: 8, 128>}, {transform_indices = @transform_1, window_bounds = array<i64: 128, 128>}, {transform_indices = @transform_2, window_bounds = array<i64: 128, 128>}, {transform_indices = @transform_3, window_bounds = array<i64: 128, 128>}, {transform_indices = @transform_4, window_bounds = array<i64: 1, 128>}, {transform_indices = @transform_5, window_bounds = array<i64: 8, 128>}]} {
    %c0_i32 = arith.constant 0 : i32
    %0 = arith.cmpi eq, %arg1, %c0_i32 : i32
    %1 = arith.extui %0 : i1 to i32
    %c0_i32_0 = arith.constant 0 : i32
    %2 = arith.cmpi ne, %1, %c0_i32_0 : i32
    scf.if %2 {
      %c0_8 = arith.constant 0 : index
      %c0_9 = arith.constant 0 : index
      %10 = vector.load %arg3[%c0_8, %c0_9] : memref<128x128xbf16, #tpu.memory_space<vmem>>, vector<128x128xbf16>
      %11 = arith.extf %10 : vector<128x128xbf16> to vector<128x128xf32>
      %c0_10 = arith.constant 0 : index
      %c0_11 = arith.constant 0 : index
      %12 = vector.load %arg4[%c0_10, %c0_11] : memref<128x128xbf16, #tpu.memory_space<vmem>>, vector<128x128xbf16>
      %13 = arith.extf %12 : vector<128x128xbf16> to vector<128x128xf32>
      %c0_12 = arith.constant 0 : index
      %c0_13 = arith.constant 0 : index
      %14 = vector.load %arg5[%c0_12, %c0_13] : memref<128x128xbf16, #tpu.memory_space<vmem>>, vector<128x128xbf16>
      %15 = arith.extf %14 : vector<128x128xbf16> to vector<128x128xf32>
      %16 = arith.mulf %13, %15 : vector<128x128xf32>
      %17 = arith.addf %11, %16 : vector<128x128xf32>
      %18 = arith.truncf %17 : vector<128x128xf32> to vector<128x128xbf16>
      %c0_14 = arith.constant 0 : index
      %c0_15 = arith.constant 0 : index
      %19 = vector.load %arg8[%c0_14, %c0_15] : memref<128x128xbf16, #tpu.memory_space<vmem>>, vector<128x128xbf16>
      tpu.vector_store %arg8[%c0_14, %c0_15], %18 {strides = array<i32>} : memref<128x128xbf16, #tpu.memory_space<vmem>>, vector<128x128xbf16>,
    } else {
    }
    %c0 = arith.constant 0 : index
    %c0_1 = arith.constant 0 : index
    %3 = vector.load %arg2[%c0, %c0_1] : memref<8x128xbf16, #tpu.memory_space<vmem>>, vector<8x128xbf16>
    %c0_2 = arith.constant 0 : index
    %c0_3 = arith.constant 0 : index
    %4 = vector.load %arg8[%c0_2, %c0_3] : memref<128x128xbf16, #tpu.memory_space<vmem>>, vector<128x128xbf16>
    %cst = arith.constant dense<0.000000e+00> : vector<8x128xf32>
    %5 = tpu.matmul %3, %4, %cst {dimension_numbers = #tpu.dot_dimension_numbers<[1], [0], [0], [1], [0, 0, 1, 1], [], []>} : vector<8x128xbf16>, vector<128x128xbf16>, vector<8x128xf32> -> vector<8x128xf32>
    %c0_4 = arith.constant 0 : index
    %c0_5 = arith.constant 0 : index
    %6 = vector.load %arg6[%c0_4, %c0_5] : memref<1x128xf32, #tpu.memory_space<vmem>>, vector<1x128xf32>
    %7 = vector.broadcast %6 : vector<1x128xf32> to vector<8x128xf32>
    %8 = arith.addf %5, %7 : vector<8x128xf32>
    %c0_6 = arith.constant 0 : index
    %c0_7 = arith.constant 0 : index
    %9 = vector.load %arg7[%c0_6, %c0_7] : memref<8x128xf32, #tpu.memory_space<vmem>>, vector<8x128xf32>
    tpu.vector_store %arg7[%c0_6, %c0_7], %8 {strides = array<i32>} : memref<8x128xf32, #tpu.memory_space<vmem>>, vector<8x128xf32>,
    return
  }
  func.func @transform_0(%arg0: i32, %arg1: i32) -> (i32, i32) {
    %c0_i32 = arith.constant 0 : i32
    %c0_i32_0 = arith.constant 0 : i32
    return %arg1, %c0_i32 : i32, i32
  }
  func.func @transform_1(%arg0: i32, %arg1: i32) -> (i32, i32) {
    %c0_i32 = arith.constant 0 : i32
    %c0_i32_0 = arith.constant 0 : i32
    return %c0_i32, %arg0 : i32, i32
  }
  func.func @transform_2(%arg0: i32, %arg1: i32) -> (i32, i32) {
    %c0_i32 = arith.constant 0 : i32
    %c0_i32_0 = arith.constant 0 : i32
    return %c0_i32, %arg0 : i32, i32
  }
  func.func @transform_3(%arg0: i32, %arg1: i32) -> (i32, i32) {
    %c0_i32 = arith.constant 0 : i32
    %c0_i32_0 = arith.constant 0 : i32
    return %c0_i32, %arg0 : i32, i32
  }
  func.func @transform_4(%arg0: i32, %arg1: i32) -> (i32, i32) {
    %c0_i32 = arith.constant 0 : i32
    %c0_i32_0 = arith.constant 0 : i32
    return %c0_i32, %arg0 : i32, i32
  }
  func.func @transform_5(%arg0: i32, %arg1: i32) -> (i32, i32) {
    %c0_i32 = arith.constant 0 : i32
    return %arg1, %arg0 : i32, i32
  }
}

</mosaic_0001>

<bundles_post_ra>
// kernel: tpu_custom_call.1
= control target key start
LH: loop header
LB: loop body
LE: loop exit
PB: predicated region body
PF: predicated region fallthrough
CT: control target
= control target key end

     0   :  { %s1873_s0 = inlined_call_operand.hbm [shape: bf16[16,128], index: 0, kind: input, shape index: {}]   ;;  %s1874_s1 = inlined_call_operand.hbm [shape: bf16[128,256], index: 1, kind: input, shape index: {}]   ;;  %s1875_s2 = inlined_call_operand.hbm [shape: bf16[128,256], index: 2, kind: input, shape index: {}]   ;;  %s1876_s3 = inlined_call_operand.hbm [shape: bf16[128,256], index: 3, kind: input, shape index: {}]   ;;  %s1877_s4 = inlined_call_operand.vmem [shape: f32[1,256], index: 4, kind: input, shape index: {}]   ;;  %s1878_s5 = inlined_call_operand.hbm [shape: f32[16,256], index: 5, kind: output, shape index: {}]  }
   0x1   :  { %1905 = sst [smem:[#allocation30_spill]] %s1874_s1 }
   0x2   :  { %1906 = sst [smem:[#allocation31_spill]] %s1877_s4 }
   0x3   :  { %1907 = sst [smem:[#allocation32_spill]] %s1878_s5 }
   0x4   :  { %10 = vsyncpa [#allocation4], 0 }
   0x5   :  { %12 = vsyncpa [#allocation4 + $0x1], 0 }
   0x6   :  { %13 = vsyncpa [#allocation7], 0 }
   0x7   :  { %15 = vsyncpa [#allocation7 + $0x1], 0 }
   0x8   :  { %16 = vsyncpa [#allocation10], 0 }
   0x9   :  { %18 = vsyncpa [#allocation10 + $0x1], 0 }
   0xa   :  { %19 = vsyncpa [#allocation5], 0 }
   0xb   :  { %21 = vsyncpa [#allocation5 + $0x1], 0  ;;  %s1395_s18 = smov 0   ;;  %s1397_s19 = smov 0  }
   0xc   :  { %s1399_s20 = smov 0   ;;  %s1401_s21 = smov 0  }
   0xd   :  { %s1403_s22 = smov 0   ;;  %s1405_s23 = smov 0  }
   0xe   :  { %s1407_s24 = smov 0   ;;  %s1409_s25 = smov 0  }
   0xf   :  { %s1411_s26 = smov 0   ;;  %s1413_s27 = smov 0  }
  0x10   :  { %s1415_s28 = smov 0   ;;  %s1417_s29 = smov 0  }
  0x11   :  { %s1419_s30 = smov 0   ;;  %s1421_s6 = smov 0  }
  0x12 LB: > { %1908 = sst [smem:[#allocation16_spill]] %s1309_s20  ;;  %p1882_p0 = scmp.eq.s32.totalorder %s1353_s6, 0  ;;  %s1353_s6 = sphi %s1421_s6, %s27_s6   ;;  %s1349_s30 = sphi %s1419_s30, %s1966_s30   ;;  %s1345_s29 = sphi %s1417_s29, %s1965_s29   ;;  %s1341_s28 = sphi %s1415_s28, %s1972_s28   ;;  %s1337_s27 = sphi %s1413_s27, %s1963_s27   ;;  %s1333_s26 = sphi %s1411_s26, %s1962_s26   ;;  %s1329_s25 = sphi %s1409_s25, %s1961_s25   ;;  %s1325_s24 = sphi %s1407_s24, %s1960_s24   ;;  %s1321_s23 = sphi %s1405_s23, %s1971_s23   ;;  %s1317_s22 = sphi %s1403_s22, %s1970_s22   ;;  %s1313_s21 = sphi %s1401_s21, %s1969_s21   ;;  %s1309_s20 = sphi %s1399_s20, %s1958_s20   ;;  %s1305_s19 = sphi %s1397_s19, %s1968_s19   ;;  %s1301_s18 = sphi %s1395_s18, %s1967_s18  }
  0x13   : > { %1909 = sst [smem:[#allocation17_spill]] %s1329_s25  ;;  %p79_p1 = scmp.ne.s32.totalorder %s1321_s23, %s1317_s22 }
  0x14   : > { %1910 = sst [smem:[#allocation18_spill]] %s1333_s26  ;;  %p1881_p2 = scmp.lt.s32.totalorder %s1353_s6, 4 }
  0x15   : > { %1911 = sst [smem:[#allocation19_spill]] %s1337_s27  ;;  %p81_p3 = por %p79_p1, %p1882_p0 }
  0x16   : > { %1912 = sst [smem:[#allocation20_spill]] %s1341_s28  ;;  %s233_s7 = sand.u32 1, %s1353_s6  }
  0x17   : > { %1913 = sst [smem:[#allocation21_spill]] %s1345_s29  ;;  %s1879_s8 = sand.u32 1, %s1321_s23  }
  0x18   : > { %1914 = sst [smem:[#allocation22_spill]] %s1349_s30  ;;  %s1475_s9 = sshll.u32 %s1879_s8, 6 }
  0x19   : > { %s1478_s10 = sshll.u32 %s1349_s30, 6  ;;  %s1915_s1 = sld [smem:[#allocation30_spill]] }
  0x1a   : > { %s237_s14 = scalar_lea.vmem [#allocation6], %s1475_s9  ;;  %p1489_p4 = pnand %p1881_p2, %p81_p3 }
  0x1b   : > { %s243_s15 = sshll.u32 %s237_s14, 4  ;;  %s1496_s17 = scalar_lea.sflag [#allocation7], %s233_s7  ;;  %s1493_s15 = int_to_ptr.vmem [resolvable:$true] %s243_s15 }
  0x1c   : > { %s1916_s16 = scalar_select %p1489_p4, 1, 0 }
  0x1d   : > { %p1502_p7 = pneg %p1489_p4 }
  0x1f   : > { %s1484_s13 = scalar_lea.hbm %s1915_s1, %s1478_s10  ;;  %s1084_s5 = scalar_lea.hbm %s1915_s1, 2048 }
  0x20   : > { %s1079_s11 = scalar_lea.hbm %s1484_s13, 1024  ;;  %p1085_p10 = scmp.lt.u32.totalorder %s1484_s13, %s1915_s1 }
  0x21   : > { %p1080_p6 = scmp.ne.s32.totalorder %s1484_s13, %s1079_s11  ;;  %p1086_p11 = scmp.lt.u32.totalorder %s1084_s5, %s1079_s11 }
  0x22   : > { %p1088_p13 = scmp.lt.u32.totalorder %s1079_s11, %s1484_s13 }
  0x23   : > { %p1082_p8 = pnand %p1502_p7, %p1080_p6  ;;  %p1087_p12 = por %p1086_p11, %p1085_p10 }
  0x25   : > { %p1083_p9 = pneg %p1082_p8  ;;  %p1089_p1 = por %p1088_p13, %p1087_p12 }
  0x27   : > { %p1090_p3 = pnand %p1089_p1, %p1083_p9 }
  0x29   : > { %1093 = shalt.err (!%p1090_p3)
}
  0x2a   : > { %s1094_s7 = scalar_lea.vmem %s1493_s15, 1024  ;;  %s1355_s8 = smov [#allocation6]  }
  0x2b   : > { %p1095_p6 = scmp.ne.s32.totalorder %s1493_s15, %s1094_s7  ;;  %s1099_s14 = sshll.u32 %s1355_s8, 4  ;;  %s1100_s14 = int_to_ptr.vmem [resolvable:$false] %s1099_s14 }
  0x2c   : > { %s1101_s4 = scalar_lea.vmem %s1100_s14, 2048  ;;  %p1102_p0 = scmp.lt.s32.totalorder %s1493_s15, %s1100_s14 }
  0x2d   : > { %p1097_p8 = pnand %p1095_p6, %p1502_p7  ;;  %p1103_p5 = scmp.lt.s32.totalorder %s1101_s4, %s1094_s7 }
  0x2f   : > { %p1098_p2 = pneg %p1097_p8  ;;  %p1104_p10 = por %p1103_p5, %p1102_p0 }
  0x31   : > { %p1105_p11 = pnand %p1104_p10, %p1098_p2 }
  0x33   : > { %1108 = shalt.err (!%p1105_p11)
}
  0x34   : > { %s1884_s5 = smov 128   ;;  %s1886_s27 = smov 64  }
  0x35   : > { %s1888_s11 = smov 4   ;;  %p297_p0 = scmp.lt.s32.totalorder %s1353_s6, 5 }
  0x36   : > { %949 = dma.hbm_to_vmem [thread:$0]  (!%p1489_p4), %s1484_s13, 1024, %s1493_s15, %s1496_s17, %s1884_s5, %s1886_s27, %s1888_s11  }
  0x37   : > { %p1918_p2 = scmp.ge.s32.totalorder %s1353_s6, 1  ;;  %s1537_s8 = sadd.s32 4294967295, %s1353_s6  }
  0x38   : > { %s36_s4 = sadd.s32 1, %s1345_s29  ;;  %s39_s1 = sadd.s32 1, %s1349_s30 }
  0x39   : > { %p1532_p5 = pnand %p1918_p2, %p297_p0  ;;  %p37_p9 = scmp.ge.s32.totalorder %s36_s4, 2 }
  0x3a   : > { %s46_s28 = sadd.s32 1, %s1333_s26  ;;  %p53_p12 = scmp.ne.s32.totalorder %s1333_s26, %s1329_s25 }
  0x3b   : > { %s1919_s7 = scalar_select %p1532_p5, 1, 0 }
  0x3c   : > { %p59_p13 = scmp.ne.s32.totalorder %s1329_s25, %s1325_s24  ;;  %s1974_s4 = smov (%p37_p9, %s36_s4), 0 }
  0x3d   : > { %1920 = sst [smem:[#allocation23_spill]] %s1919_s7  ;;  %s1976_s1 = smov (!%p37_p9, %s39_s1), %s1349_s30 }
  0x3e   : > { %1921 = sst [smem:[#allocation24_spill]] %s1974_s4  ;;  %s43_s13 = ssub.s32 %s1345_s29, %s1974_s4 }
  0x3f   : > { %p1922_p1 = scmp.eq.s32.totalorder %s1353_s6, 0  ;;  %p41_p6 = scmp.ge.s32.totalorder %s1976_s1, 2 }
  0x40   : > { %p44_p8 = scmp.eq.s32.totalorder %s43_s13, 0  ;;  %p60_p10 = scmp.eq.s32.totalorder %s1537_s8, 0 }
  0x41   : > { %p1554_p3 = por %p1922_p1, %p53_p12  ;;  %s72_s24 = sadd.s32 1, %s1321_s23 }
  0x42   : > { %s1978_s1 = smov (%p41_p6, %s1976_s1), 0  ;;  %p1565_p11 = por %p60_p10, %p59_p13 }
  0x43   : > { %1924 = sst [smem:[#allocation25_spill]] %s1978_s1  ;;  %s69_s11 = ssub.s32 %s1349_s30, %s1978_s1 }
  0x44   : > { %s1563_s5 = scalar_select %p44_p8, %s1333_s26, %s46_s28  }
  0x45   : > { %s1926_s27 = scalar_select %p1565_p11, 1, 0 }
  0x46   : > { %1925 = sst [smem:[#allocation26_spill]] %s1563_s5  ;;  %p70_p0 = scmp.eq.s32.totalorder %s69_s11, 0 }
  0x47   : > { %p85_p2 = scmp.ne.s32.totalorder %s1317_s22, %s1313_s21  ;;  %s175_s14 = sor.u32 %s69_s11, %s43_s13 }
  0x48   : > { %s178_s4 = sadd.s32 1, %s1309_s20  ;;  %p176_p12 = scmp.eq.s32.totalorder %s175_s14, 0 }
  0x49   : > { %s1575_s25 = scalar_select %p70_p0, %s1321_s23, %s72_s24  }
  0x4a   : > { %p1577_p9 = por %p85_p2, %p60_p10  ;;  %p188_p13 = scmp.ne.s32.totalorder %s1309_s20, %s1305_s19 }
  0x4b   : > { %1927 = sst [smem:[#allocation27_spill]] %s1575_s25  ;;  %p189_p1 = scmp.eq.s32.totalorder %s1537_s8, 3 }
  0x4c   : > { %s1928_s7 = scalar_select %p1577_p9, 1, 0 }
  0x4d   : > { %s1585_s28 = scalar_select %p176_p12, %s1309_s20, %s178_s4  }
  0x4e   : > { %1929 = sst [smem:[#allocation28_spill]] %s1928_s7  ;;  %p1587_p6 = por %p189_p1, %p188_p13 }
  0x4f   : > { %1930 = sst [smem:[#allocation29_spill]] %s1585_s28  ;;  %p194_p8 = scmp.ne.s32.totalorder %s1305_s19, %s1301_s18 }
  0x50   : > { %s1931_s1 = scalar_select %p1587_p6, 1, 0 }
  0x51   : > { %s1932_s21 = sadd.s32 4294967294, %s1353_s6   ;;  %s215_s11 = sand.u32 1, %s1333_s26  }
  0x52   : > { %p195_p0 = scmp.eq.s32.totalorder %s1932_s21, 3  ;;  %s766_s13 = sshll.u32 %s215_s11, 2 }
  0x53   : > { %s767_s14 = sshll.u32 %s1345_s29, 6  ;;  %s219_s30 = scalar_lea.vmem [#allocation3], %s766_s13 }
  0x54   : > { %p1596_p10 = por %p195_p0, %p194_p8  ;;  %s226_s5 = sshll.u32 %s219_s30, 4  ;;  %s1606_s5 = int_to_ptr.vmem [resolvable:$true] %s226_s5 }
  0x55   : > { %s1604_s4 = scalar_lea.hbm %s1873_s0, %s767_s14  ;;  %p1934_p2 = scmp.lt.s32.totalorder %s1353_s6, 4 }
  0x56   : > { %s1933_s24 = scalar_select %p1596_p10, 1, 0 }
  0x57   : > { %p1612_p12 = pnand %p1934_p2, %p1554_p3  ;;  %s1620_s25 = scalar_lea.hbm %s1875_s2, %s1478_s10 }
  0x58   : > { %s257_s30 = scalar_lea.vmem [#allocation8], %s1475_s9  ;;  %s216_s14 = scalar_lea.sflag [#allocation4], %s215_s11 }
  0x59   : > { %s263_s7 = sshll.u32 %s257_s30, 4  ;;  %s1109_s26 = scalar_lea.hbm %s1604_s4, 64  ;;  %s1623_s7 = int_to_ptr.vmem [resolvable:$true] %s263_s7 }
  0x5a   : > { %p1110_p13 = scmp.ne.s32.totalorder %s1604_s4, %s1109_s26  ;;  %p1111_p1 = pneg %p1612_p12 }
  0x5b   : > { %s1114_s29 = scalar_lea.hbm %s1873_s0, 128  ;;  %p1115_p0 = scmp.lt.u32.totalorder %s1604_s4, %s1873_s0 }
  0x5c   : > { %p1112_p3 = pnand %p1111_p1, %p1110_p13  ;;  %p1116_p2 = scmp.lt.u32.totalorder %s1114_s29, %s1109_s26 }
  0x5d   : > { %p1118_p6 = scmp.lt.u32.totalorder %s1109_s26, %s1604_s4 }
  0x5e   : > { %p1113_p8 = pneg %p1112_p3  ;;  %p1117_p10 = por %p1116_p2, %p1115_p0 }
  0x60   : > { %p1119_p9 = por %p1118_p6, %p1117_p10 }
  0x62   : > { %p1120_p11 = pnand %p1119_p9, %p1113_p8 }
  0x64   : > { %1123 = shalt.err (!%p1120_p11)
}
  0x65   : > { %s1124_s11 = scalar_lea.vmem %s1606_s5, 64  ;;  %s1359_s28 = smov [#allocation3]  }
  0x66   : > { %p1125_p13 = scmp.ne.s32.totalorder %s1606_s5, %s1124_s11  ;;  %s1129_s30 = sshll.u32 %s1359_s28, 4  ;;  %s1130_s30 = int_to_ptr.vmem [resolvable:$false] %s1129_s30 }
  0x67   : > { %s1131_s20 = scalar_lea.vmem %s1130_s30, 128  ;;  %p1132_p4 = scmp.lt.s32.totalorder %s1606_s5, %s1130_s30 }
  0x68   : > { %p1127_p3 = pnand %p1125_p13, %p1111_p1  ;;  %p1133_p0 = scmp.lt.s32.totalorder %s1131_s20, %s1124_s11 }
  0x6a   : > { %p1128_p5 = pneg %p1127_p3  ;;  %p1134_p2 = por %p1133_p0, %p1132_p4 }
  0x6c   : > { %p1135_p6 = pnand %p1134_p2, %p1128_p5 }
  0x6e   : > { %1138 = shalt.err (!%p1135_p6)
}
  0x6f   : > { %946 = dma.hbm_to_vmem [thread:$0]  (!%p1612_p12), %s1604_s4, 64, %s1606_s5, %s216_s14  }
  0x70   : > { %s1139_s26 = scalar_lea.hbm %s1620_s25, 1024  ;;  %s1144_s13 = scalar_lea.hbm %s1875_s2, 2048 }
  0x71   : > { %p1140_p11 = scmp.ne.s32.totalorder %s1620_s25, %s1139_s26  ;;  %p1145_p4 = scmp.lt.u32.totalorder %s1620_s25, %s1875_s2 }
  0x72   : > { %p1146_p5 = scmp.lt.u32.totalorder %s1144_s13, %s1139_s26  ;;  %p1148_p8 = scmp.lt.u32.totalorder %s1139_s26, %s1620_s25 }
  0x73   : > { %p1142_p9 = pnand %p1140_p11, %p1502_p7 }
  0x74   : > { %p1147_p1 = por %p1146_p5, %p1145_p4 }
  0x75   : > { %p1143_p10 = pneg %p1142_p9 }
  0x76   : > { %p1149_p13 = por %p1148_p8, %p1147_p1 }
  0x78   : > { %p1150_p3 = pnand %p1149_p13, %p1143_p10 }
  0x7a   : > { %1153 = shalt.err (!%p1150_p3)
}
  0x7b   : > { %s1154_s5 = scalar_lea.vmem %s1623_s7, 1024  ;;  %s1360_s4 = smov [#allocation8]  }
  0x7c   : > { %p1155_p12 = scmp.ne.s32.totalorder %s1623_s7, %s1154_s5  ;;  %s1159_s21 = sshll.u32 %s1360_s4, 4  ;;  %s1160_s21 = int_to_ptr.vmem [resolvable:$false] %s1159_s21 }
  0x7d   : > { %s1161_s14 = scalar_lea.vmem %s1160_s21, 2048  ;;  %p1162_p6 = scmp.lt.s32.totalorder %s1623_s7, %s1160_s21 }
  0x7e   : > { %p1157_p0 = pnand %p1155_p12, %p1502_p7  ;;  %p1163_p11 = scmp.lt.s32.totalorder %s1161_s14, %s1154_s5 }
  0x80   : > { %p1158_p2 = pneg %p1157_p0  ;;  %p1164_p9 = por %p1163_p11, %p1162_p6 }
  0x82   : > { %p1165_p4 = pnand %p1164_p9, %p1158_p2 }
  0x84   : > { %1168 = shalt.err (!%p1165_p4)
}
  0x85   : > { %p1936_p10 = scmp.ne.s32.totalorder %s1916_s16, 0  ;;  %s1937_s30 = smov 4  }
  0x86   : > { %s1938_s20 = smov 64   ;;  %s1939_s26 = smov 128  }
  0x87   : > { %952 = dma.hbm_to_vmem [thread:$0]  (!%p1936_p10), %s1620_s25, 1024, %s1623_s7, %s1496_s17, %s1939_s26, %s1938_s20, %s1937_s30  }
  0x88   : > { %s1679_s13 = scalar_lea.hbm %s1876_s3, %s1478_s10  ;;  %s277_s11 = scalar_lea.vmem [#allocation9], %s1475_s9 }
  0x89   : > { %s283_s28 = sshll.u32 %s277_s11, 4  ;;  %s1940_s5 = sand.u32 1, %s1321_s23   ;;  %s1682_s28 = int_to_ptr.vmem [resolvable:$true] %s283_s28 }
  0x8a   : > { %s1686_s4 = scalar_lea.sflag [#allocation10], %s1940_s5  ;;  %s1169_s21 = scalar_lea.hbm %s1679_s13, 1024 }
  0x8b   : > { %p1170_p5 = scmp.ne.s32.totalorder %s1679_s13, %s1169_s21  ;;  %s1174_s10 = scalar_lea.hbm %s1876_s3, 2048 }
  0x8c   : > { %p1175_p13 = scmp.lt.u32.totalorder %s1679_s13, %s1876_s3  ;;  %p1176_p3 = scmp.lt.u32.totalorder %s1174_s10, %s1169_s21 }
  0x8d   : > { %p1172_p1 = pnand %p1170_p5, %p1502_p7  ;;  %p1178_p0 = scmp.lt.u32.totalorder %s1169_s21, %s1679_s13 }
  0x8e   : > { %p1177_p12 = por %p1176_p3, %p1175_p13 }
  0x8f   : > { %p1173_p8 = pneg %p1172_p1 }
  0x90   : > { %p1179_p2 = por %p1178_p0, %p1177_p12 }
  0x92   : > { %p1180_p6 = pnand %p1179_p2, %p1173_p8 }
  0x94   : > { %1183 = shalt.err (!%p1180_p6)
}
  0x95   : > { %s1184_s9 = scalar_lea.vmem %s1682_s28, 1024  ;;  %s1361_s15 = smov [#allocation9]  }
  0x96   : > { %p1185_p11 = scmp.ne.s32.totalorder %s1682_s28, %s1184_s9  ;;  %s1189_s29 = sshll.u32 %s1361_s15, 4  ;;  %s1190_s29 = int_to_ptr.vmem [resolvable:$false] %s1189_s29 }
  0x97   : > { %s1191_s11 = scalar_lea.vmem %s1190_s29, 2048  ;;  %p1192_p5 = scmp.lt.s32.totalorder %s1682_s28, %s1190_s29 }
  0x98   : > { %p1187_p9 = pnand %p1185_p11, %p1502_p7  ;;  %p1193_p1 = scmp.lt.s32.totalorder %s1191_s11, %s1184_s9 }
  0x9a   : > { %p1188_p4 = pneg %p1187_p9  ;;  %p1194_p13 = por %p1193_p1, %p1192_p5 }
  0x9c   : > { %p1195_p3 = pnand %p1194_p13, %p1188_p4 }
  0x9e   : > { %1198 = shalt.err (!%p1195_p3)
}
  0x9f   : > { %955 = dma.hbm_to_vmem [thread:$0]  (!%p1936_p10), %s1679_s13, 1024, %s1682_s28, %s1686_s4, %s1939_s26, %s1938_s20, %s1937_s30  }
  0xa0   : > { %s1941_s12 = sld [smem:[#allocation23_spill]] }
  0xa6   : > { %p1942_p7 = scmp.ne.s32.totalorder %s1941_s12, 0 }
  0xa7   : > { %s1943_s5 = sld [smem:[#allocation17_spill]] (!%p1942_p7)  ;;  %p1944_p8 = scmp.ne.s32.totalorder (!%p1942_p7), %s1926_s27, 0 }
  0xa8   : > { %301 = sbr.rel (%p1942_p7) target bundleno = 488 (0x1e8), region = 40 }
  0xad   : > { %s303_s21 = sand.u32 (!%p1942_p7), 1, %s1943_s5  }
  0xae   : > { %s1716_s17 = sshll.u32 (!%p1942_p7), %s303_s21, 2  ;;  %s304_s25 = scalar_lea.sflag (!%p1942_p7), [#allocation4], %s303_s21 }
  0xaf   : > { %s307_s10 = scalar_lea.vmem [#allocation3], %s1716_s17 }
  0xb0   : > { %1284 = dma.done.wait (%p1944_p8), %s304_s25, 64  }
  0xb1   : > { %1286 = vsyncadd (%p1944_p8), %s304_s25, 4294967232  ;;  %s1945_s16 = sld [smem:[#allocation28_spill]]  ;;  %s312_s30 = sand.u32 1, %s1537_s8  }
  0xb2   : > { %s314_s20 = sand.u32 1, %s1317_s22   ;;  %s313_s13 = scalar_lea.sflag [#allocation7], %s312_s30 }
  0xb3   : > { %s776_s26 = sshll.u32 %s314_s20, 6 }
  0xb4   : > { %s1725_s28 = scalar_lea.vmem [#allocation6], %s776_s26 }
  0xb7   : > { %p1946_p10 = scmp.ne.s32.totalorder %s1945_s16, 0 }
  0xb9   : > { %1288 = dma.done.wait (%p1946_p10), %s313_s13, 2048  }
  0xba   : > { %1290 = vsyncadd (%p1946_p10), %s313_s13, 4294965248  ;;  %s1731_s4 = scalar_lea.vmem [#allocation8], %s776_s26  ;;  %s331_s7 = scalar_lea.sflag [#allocation10], %s314_s20 }
  0xbb   : > { %s1733_s27 = scalar_lea.vmem [#allocation9], %s776_s26 }
  0xbc   : > { %1292 = dma.done.wait (%p1946_p10), %s331_s7, 1024  }
  0xbd   : > { %1294 = vsyncadd (%p1946_p10), %s331_s7, 4294966272  ;;  %s1947_s8 = sld [smem:[#allocation20_spill]]  ;;  %s376_s14 = sand.u32 1, %s1305_s19  }
  0xbe   : > { %s1743_s9 = sshll.u32 %s376_s14, 3  ;;  %s1948_s11 = sld [smem:[#allocation31_spill]] }
  0xbf   : > { %s378_s5 = scalar_lea.vmem [#allocation11], %s1743_s9  ;;  %s1949_s21 = sld [smem:[#allocation19_spill]] }
  0xc3   : > { %p379_p12 = scmp.lt.s32.totalorder %s1947_s8, 1 }
  0xc5   : > { %s1980_s8 = smov (!%p379_p12, %s1947_s8), 1  ;;  %p780_p0 = scmp.ne.s32.totalorder %s1949_s21, 0 }
  0xc6   : > { %s381_s12 = scalar_lea.vmem %s1948_s11, %s1980_s8  ;;  %v788_v0 = vld [vmem:[%s1725_s28] sm:$0xff] (!%p780_p0)   ;;  %v883_v7 = vld [vmem:[%s1725_s28 + $0x8] sm:$0xff] (!%p780_p0)   ;;  %v884_v14 = vld [vmem:[%s1725_s28 + $0x10] sm:$0xff] (!%p780_p0)  }
  0xc7   : > { %386 = sbr.rel (%p780_p0) target bundleno = 227 (0xe3), region = 60  ;;  %v820_v1 = vld [vmem:[%s1731_s4] sm:$0xff] (!%p780_p0)   ;;  %v789_v3 = vunpack.c.l.bf16 (!%p780_p0), %v788_v0  ;;  %v790_v4 = vunpack.c.h.bf16 (!%p780_p0), %v788_v0  ;;  %v890_v8 = vld [vmem:[%s1731_s4 + $0x8] sm:$0xff] (!%p780_p0)   ;;  %v793_v12 = vunpack.c.l.bf16 (!%p780_p0), %v883_v7  ;;  %v794_v13 = vunpack.c.h.bf16 (!%p780_p0), %v883_v7  ;;  %v891_v15 = vld [vmem:[%s1731_s4 + $0x10] sm:$0xff] (!%p780_p0)  }
  0xc8   : > { %v852_v2 = vld [vmem:[%s1733_s27] sm:$0xff] (!%p780_p0)   ;;  %v821_v5 = vunpack.c.l.bf16 (!%p780_p0), %v820_v1  ;;  %v822_v6 = vunpack.c.h.bf16 (!%p780_p0), %v820_v1  ;;  %v897_v9 = vld [vmem:[%s1733_s27 + $0x8] sm:$0xff] (!%p780_p0)   ;;  %v825_v16 = vunpack.c.l.bf16 (!%p780_p0), %v890_v8  ;;  %v826_v17 = vunpack.c.h.bf16 (!%p780_p0), %v890_v8  ;;  %v898_v20 = vld [vmem:[%s1733_s27 + $0x10] sm:$0xff] (!%p780_p0)  }
  0xc9   : > { %v853_v10 = vunpack.c.l.bf16 (!%p780_p0), %v852_v2  ;;  %v854_v11 = vunpack.c.h.bf16 (!%p780_p0), %v852_v2  ;;  %v857_v18 = vunpack.c.l.bf16 (!%p780_p0), %v897_v9  ;;  %v858_v19 = vunpack.c.h.bf16 (!%p780_p0), %v897_v9  ;;  %v885_v25 = vld [vmem:[%s1725_s28 + $0x18] sm:$0xff] (!%p780_p0)   ;;  %v886_v40 = vld [vmem:[%s1725_s28 + $0x20] sm:$0xff] (!%p780_p0)   ;;  %v887_v51 = vld [vmem:[%s1725_s28 + $0x28] sm:$0xff] (!%p780_p0)  }
  0xca   : > { %v797_v23 = vunpack.c.l.bf16 (!%p780_p0), %v884_v14  ;;  %v798_v24 = vunpack.c.h.bf16 (!%p780_p0), %v884_v14  ;;  %v829_v28 = vunpack.c.l.bf16 (!%p780_p0), %v891_v15  ;;  %v830_v29 = vunpack.c.h.bf16 (!%p780_p0), %v891_v15  ;;  %v892_v30 = vld [vmem:[%s1731_s4 + $0x18] sm:$0xff] (!%p780_p0)   ;;  %v893_v45 = vld [vmem:[%s1731_s4 + $0x20] sm:$0xff] (!%p780_p0)   ;;  %v894_v56 = vld [vmem:[%s1731_s4 + $0x28] sm:$0xff] (!%p780_p0)  }
  0xcb   : > { %v483_v21 = vmul.f32 (!%p780_p0), %v853_v10, %v821_v5  ;;  %v484_v22 = vmul.f32 (!%p780_p0), %v854_v11, %v822_v6  ;;  %v485_v26 = vmul.f32 (!%p780_p0), %v857_v18, %v825_v16  ;;  %v486_v27 = vmul.f32 (!%p780_p0), %v858_v19, %v826_v17  ;;  %v899_v35 = vld [vmem:[%s1733_s27 + $0x18] sm:$0xff] (!%p780_p0)   ;;  %v900_v50 = vld [vmem:[%s1733_s27 + $0x20] sm:$0xff] (!%p780_p0)   ;;  %v901_v61 = vld [vmem:[%s1733_s27 + $0x28] sm:$0xff] (!%p780_p0)  }
  0xcc   : > { %v861_v33 = vunpack.c.l.bf16 (!%p780_p0), %v898_v20  ;;  %v862_v34 = vunpack.c.h.bf16 (!%p780_p0), %v898_v20  ;;  %v801_v38 = vunpack.c.l.bf16 (!%p780_p0), %v885_v25  ;;  %v802_v39 = vunpack.c.h.bf16 (!%p780_p0), %v885_v25  ;;  %v888_v2 = vld [vmem:[%s1725_s28 + $0x30] sm:$0xff] (!%p780_p0)   ;;  %v889_v17 = vld [vmem:[%s1725_s28 + $0x38] sm:$0xff] (!%p780_p0)  }
  0xcd   : > { %v499_v31 = vadd.f32 (!%p780_p0), %v789_v3, %v483_v21  ;;  %v500_v32 = vadd.f32 (!%p780_p0), %v790_v4, %v484_v22  ;;  %v501_v36 = vadd.f32 (!%p780_p0), %v793_v12, %v485_v26  ;;  %v502_v37 = vadd.f32 (!%p780_p0), %v794_v13, %v486_v27  ;;  %v895_v7 = vld [vmem:[%s1731_s4 + $0x30] sm:$0xff] (!%p780_p0)   ;;  %v896_v22 = vld [vmem:[%s1731_s4 + $0x38] sm:$0xff] (!%p780_p0)  }
  0xce   : > { %v487_v42 = vmul.f32 %v861_v33, %v829_v28  ;;  %v488_v43 = vmul.f32 %v862_v34, %v830_v29  ;;  %v833_v44 = vunpack.c.l.bf16 %v892_v30  ;;  %v834_v47 = vunpack.c.h.bf16 %v892_v30  ;;  %v902_v12 = vld [vmem:[%s1733_s27 + $0x30] sm:$0xff]   ;;  %v903_v27 = vld [vmem:[%s1733_s27 + $0x38] sm:$0xff]  }
  0xcf   : > { %v515_v41 = vpack.c.bf16 %v500_v32, %v499_v31  ;;  %v516_v46 = vpack.c.bf16 %v502_v37, %v501_v36  ;;  %v865_v48 = vunpack.c.l.bf16 %v899_v35  ;;  %v866_v49 = vunpack.c.h.bf16 %v899_v35 }
  0xd0   : > { %v503_v52 = vadd.f32 %v797_v23, %v487_v42  ;;  %v504_v53 = vadd.f32 %v798_v24, %v488_v43  ;;  %v805_v54 = vunpack.c.l.bf16 %v886_v40  ;;  %v806_v55 = vunpack.c.h.bf16 %v886_v40 }
  0xd1   : > { %523 = vst [vmem:[#allocation2] sm:$0xff] %v515_v41  ;;  %524 = vst [vmem:[#allocation2 + $0x8] sm:$0xff] %v516_v46  ;;  %v489_v57 = vmul.f32 %v865_v48, %v833_v44  ;;  %v490_v58 = vmul.f32 %v866_v49, %v834_v47  ;;  %v837_v59 = vunpack.c.l.bf16 %v893_v45  ;;  %v838_v60 = vunpack.c.h.bf16 %v893_v45 }
  0xd2   : > { %v517_v62 = vpack.c.bf16 %v504_v53, %v503_v52  ;;  %v869_v63 = vunpack.c.l.bf16 %v900_v50  ;;  %v870_v0 = vunpack.c.h.bf16 %v900_v50  ;;  %v809_v1 = vunpack.c.l.bf16 %v887_v51 }
  0xd3   : > { %v505_v3 = vadd.f32 %v801_v38, %v489_v57  ;;  %v506_v4 = vadd.f32 %v802_v39, %v490_v58  ;;  %v810_v5 = vunpack.c.h.bf16 %v887_v51  ;;  %v841_v6 = vunpack.c.l.bf16 %v894_v56 }
  0xd4   : > { %525 = vst [vmem:[#allocation2 + $0x10] sm:$0xff] %v517_v62  ;;  %v491_v8 = vmul.f32 %v869_v63, %v837_v59  ;;  %v492_v9 = vmul.f32 %v870_v0, %v838_v60  ;;  %v842_v10 = vunpack.c.h.bf16 %v894_v56  ;;  %v873_v11 = vunpack.c.l.bf16 %v901_v61 }
  0xd5   : > { %v518_v13 = vpack.c.bf16 %v506_v4, %v505_v3  ;;  %v874_v14 = vunpack.c.h.bf16 %v901_v61  ;;  %v813_v15 = vunpack.c.l.bf16 %v888_v2  ;;  %v814_v16 = vunpack.c.h.bf16 %v888_v2 }
  0xd6   : > { %v507_v18 = vadd.f32 %v805_v54, %v491_v8  ;;  %v508_v19 = vadd.f32 %v806_v55, %v492_v9  ;;  %v493_v20 = vmul.f32 %v873_v11, %v841_v6  ;;  %v845_v21 = vunpack.c.l.bf16 %v895_v7 }
  0xd7   : > { %526 = vst [vmem:[#allocation2 + $0x18] sm:$0xff] %v518_v13  ;;  %v494_v23 = vmul.f32 %v874_v14, %v842_v10  ;;  %v846_v24 = vunpack.c.h.bf16 %v895_v7  ;;  %v877_v25 = vunpack.c.l.bf16 %v902_v12  ;;  %v878_v26 = vunpack.c.h.bf16 %v902_v12 }
  0xd8   : > { %v519_v28 = vpack.c.bf16 %v508_v19, %v507_v18  ;;  %v509_v29 = vadd.f32 %v809_v1, %v493_v20  ;;  %v817_v30 = vunpack.c.l.bf16 %v889_v17  ;;  %v849_v34 = vunpack.c.l.bf16 %v896_v22 }
  0xd9   : > { %v510_v31 = vadd.f32 %v810_v5, %v494_v23  ;;  %v495_v32 = vmul.f32 %v877_v25, %v845_v21  ;;  %v496_v33 = vmul.f32 %v878_v26, %v846_v24  ;;  %v818_v35 = vunpack.c.h.bf16 %v889_v17 }
  0xda   : > { %527 = vst [vmem:[#allocation2 + $0x20] sm:$0xff] %v519_v28  ;;  %v850_v36 = vunpack.c.h.bf16 %v896_v22  ;;  %v881_v37 = vunpack.c.l.bf16 %v903_v27  ;;  %v882_v38 = vunpack.c.h.bf16 %v903_v27 }
  0xdb   : > { %v520_v39 = vpack.c.bf16 %v510_v31, %v509_v29  ;;  %v511_v40 = vadd.f32 %v813_v15, %v495_v32  ;;  %v512_v41 = vadd.f32 %v814_v16, %v496_v33 }
  0xdc   : > { %v497_v42 = vmul.f32 %v881_v37, %v849_v34  ;;  %v498_v43 = vmul.f32 %v882_v38, %v850_v36 }
  0xdd   : > { %528 = vst [vmem:[#allocation2 + $0x28] sm:$0xff] %v520_v39  ;;  %v521_v44 = vpack.c.bf16 %v512_v41, %v511_v40 }
  0xde   : > { %v513_v45 = vadd.f32 %v817_v30, %v497_v42  ;;  %v514_v46 = vadd.f32 %v818_v35, %v498_v43 }
  0xdf   : > { %529 = vst [vmem:[#allocation2 + $0x30] sm:$0xff] %v521_v44 }
  0xe0   : > { %v522_v47 = vpack.c.bf16 %v514_v46, %v513_v45 }
  0xe2   : > { %530 = vst [vmem:[#allocation2 + $0x38] sm:$0xff] %v522_v47 }
  0xe3 PF: > { %v532_v48 = vld [vmem:[#allocation2] sm:$0xff]  ;;  %v1362_v49 = vmov 0.0   ;;  %vm1363_vm0 = vmmov 0   ;;  %v533_v50 = vld [vmem:[#allocation2 + $0x8] sm:$0xff]  ;;  %v534_v51 = vld [vmem:[#allocation2 + $0x10] sm:$0xff]  ;;  %s1950_s25 = sld [smem:[#allocation19_spill]] }
  0xe4   : > { %913 = vmatprep.subr.bf16.mxu0 %v1362_v49  ;;  %929 = vmatprep.mubr.msk.bf16.mxu0 %vm1363_vm0, %v1362_v49  ;;  %v535_v52 = vld [vmem:[#allocation2 + $0x18] sm:$0xff]  ;;  %s1951_s16 = sld [smem:[#allocation20_spill]]  ;;  %v536_v53 = vld [vmem:[#allocation2 + $0x20] sm:$0xff]  ;;  %v537_v54 = vld [vmem:[#allocation2 + $0x28] sm:$0xff]  ;;  %s604_s7 = sshll.u32 %s378_s5, 4  ;;  %s1794_s7 = int_to_ptr.vmem [resolvable:$true] %s604_s7 }
  0xe5   : > { %914 = vmatpush3.bf16.msra.mxu0 %v532_v48  ;;  %v531_v57 = vld [vmem:[%s307_s10] sm:$0xf]  ;;  %s1953_s17 = sld [smem:[#allocation32_spill]]  ;;  %s589_s10 = scalar_lea.sflag [#allocation5], %s376_s14 }
  0xe6   : > { %915 = vmatprep.subr.bf16.mxu0 %v1362_v49  ;;  %v538_v55 = vld [vmem:[#allocation2 + $0x30] sm:$0xff]  ;;  %v781_v58 = vld [vmem:[%s381_s12] ss:$0 sm:$0xff]  ;;  %s1199_s8 = scalar_lea.vmem %s1794_s7, 128  ;;  %p1954_p6 = scmp.ne.s32.totalorder %s1931_s1, 0 }
  0xe7   : > { %p1200_p2 = scmp.ne.s32.totalorder %s1794_s7, %s1199_s8  ;;  %s1364_s11 = smov [#allocation11]  }
  0xe8   : > { %s1203_s12 = sshll.u32 %s1364_s11, 4  ;;  %s1204_s12 = int_to_ptr.vmem [resolvable:$false] %s1203_s12 }
  0xe9   : > { %916 = vmatpush3.bf16.msra.mxu0 %v533_v50  ;;  %v539_v56 = vld [vmem:[#allocation2 + $0x38] sm:$0xff]  ;;  %s783_s30 = sshll.u32 %s1950_s25, 1  ;;  %p1201_p11 = pnand %p1200_p2, %p1954_p6 }
  0xea   : > { %917 = vmatprep.subr.bf16.mxu0 %v1362_v49  ;;  %s600_s20 = sadd.s32 %s1951_s16, %s783_s30  ;;  %s1205_s21 = scalar_lea.vmem %s1204_s12, 256 }
  0xeb   : > { %s784_s4 = sshll.u32 %s600_s20, 7  ;;  %p1202_p9 = pneg %p1201_p11 }
  0xec   : > { %s1792_s29 = scalar_lea.hbm %s1953_s17, %s784_s4  ;;  %p1206_p4 = scmp.lt.s32.totalorder %s1794_s7, %s1204_s12 }
  0xed   : > { %918 = vmatpush3.bf16.msra.mxu0 %v534_v51  ;;  %p1207_p5 = scmp.lt.s32.totalorder %s1205_s21, %s1199_s8 }
  0xee   : > { %919 = vmatprep.subr.bf16.mxu0 %v1362_v49 }
  0xef   : > { %p1208_p1 = por %p1207_p5, %p1206_p4 }
  0xf1   : > { %920 = vmatpush3.bf16.msra.mxu0 %v535_v52  ;;  %p1209_p13 = pnand %p1208_p1, %p1202_p9 }
  0xf2   : > { %921 = vmatprep.subr.bf16.mxu0 %v1362_v49 }
  0xf5   : > { %922 = vmatpush3.bf16.msra.mxu0 %v536_v53 }
  0xf6   : > { %923 = vmatprep.subr.bf16.mxu0 %v1362_v49 }
  0xf9   : > { %924 = vmatpush3.bf16.msra.mxu0 %v537_v54 }
  0xfa   : > { %925 = vmatprep.subr.bf16.mxu0 %v1362_v49 }
  0xfd   : > { %926 = vmatpush3.bf16.msra.mxu0 %v538_v55 }
  0xfe   : > { %927 = vmatprep.subr.bf16.mxu0 %v1362_v49 }
 0x101   : > { %928 = vmatpush3.bf16.msra.mxu0 %v539_v56 }
 0x104   : > { %930 = vmatmul.mubr.bf16.vlgmr.msra.gmra.mrb[0].mxu0 %v531_v57 }
 0x1d7   : > { %v581_v59 = vpop.f32.mrb[0].mxu0 }
 0x1d8   : > { %v582_v60 = vadd.f32 %v781_v58, %v581_v59  ;;  %v931_v61 = vpop.f32.mrb[1].mxu0 }
 0x1d9   : > { %v584_v62 = vpop.f32.mrb[2].mxu0 }
 0x1da   : > { %587 = vst [vmem:[%s378_s5] sm:$0xff] %v582_v60  ;;  %v932_v63 = vpop.f32.mrb[3].mxu0 }
 0x1db   : > { %1212 = shalt.err (!%p1209_p13)
}
 0x1dc   : > { %s1213_s14 = scalar_lea.hbm %s1792_s29, 128  ;;  %s1217_s25 = scalar_lea.hbm %s1953_s17, 512 }
 0x1dd   : > { %p1214_p3 = scmp.ne.s32.totalorder %s1792_s29, %s1213_s14  ;;  %p1218_p10 = scmp.lt.u32.totalorder %s1792_s29, %s1953_s17 }
 0x1de   : > { %p1219_p12 = scmp.lt.u32.totalorder %s1217_s25, %s1213_s14  ;;  %p1221_p2 = scmp.lt.u32.totalorder %s1213_s14, %s1792_s29 }
 0x1df   : > { %p1215_p7 = pnand %p1214_p3, %p1954_p6 }
 0x1e0   : > { %p1220_p0 = por %p1219_p12, %p1218_p10 }
 0x1e1   : > { %p1216_p8 = pneg %p1215_p7 }
 0x1e2   : > { %p1222_p11 = por %p1221_p2, %p1220_p0 }
 0x1e4   : > { %p1223_p9 = pnand %p1222_p11, %p1216_p8 }
 0x1e6   : > { %1226 = shalt.err (!%p1223_p9)
}
 0x1e7   : > { %941 = dma.vmem_to_hbm [thread:$0]  (%p1954_p6), %s1794_s7, 128, %s1792_s29, %s589_s10  }
 0x1e8 PF: > { %p961_p4 = scmp.ge.s32.totalorder %s1353_s6, 2  ;;  %s616_s20 = sand.u32 1, %s1301_s18  }
 0x1e9   : > { %p1955_p5 = scmp.ne.s32.totalorder %s1933_s24, 0  ;;  %s617_s26 = scalar_lea.sflag [#allocation5], %s616_s20 }
 0x1eb   : > { %p957_p1 = pnand %p961_p4, %p1955_p5 }
 0x1ed   : > { %1296 = dma.done.wait (!%p957_p1), %s617_s26, 128  }
 0x1ee   : > { %1298 = vsyncadd (!%p957_p1), %s617_s26, 4294967168  ;;  %s27_s6 = sadd.s32 1, %s1353_s6   ;;  %s1957_s1 = sld [smem:[#allocation16_spill]] }
 0x1ef   : > { %p1826_p13 = scmp.ge.s32.totalorder %s27_s6, 6   ;;  %s1958_s20 = sld [smem:[#allocation29_spill]] }
 0x1f0   : > { %s1959_s28 = sld [smem:[#allocation27_spill]]  ;;  %s1960_s24 = sld [smem:[#allocation17_spill]] }
 0x1f1   : > { %s1961_s25 = sld [smem:[#allocation18_spill]]  ;;  %s1962_s26 = sld [smem:[#allocation26_spill]] }
 0x1f2   : > { %s1963_s27 = sld [smem:[#allocation21_spill]]  ;;  %s1964_s4 = sld [smem:[#allocation22_spill]] }
 0x1f3   : > { %s1965_s29 = sld [smem:[#allocation24_spill]]  ;;  %s1966_s30 = sld [smem:[#allocation25_spill]] }
 0x1f4   : > { %s1967_s18 = smov %s1305_s19  ;;  %s1968_s19 = smov %s1957_s1 }
 0x1f5   : > { %s1969_s21 = smov %s1317_s22  ;;  %s1970_s22 = smov %s1321_s23 }
 0x1f6   : > { %s1971_s23 = smov %s1959_s28  ;;  %26 = sbr.rel (!%p1826_p13) target bundleno = 18 (0x12), region = 129 }
 0x1f8   : > { %s1972_s28 = smov %s1964_s4 }
 0x1fd   :  { %622 = vsyncpa [#allocation4], 1 }
 0x1fe   :  { %624 = vsyncpa [#allocation4 + $0x1], 1 }
 0x1ff   :  { %625 = vsyncpa [#allocation7], 1 }
 0x200   :  { %627 = vsyncpa [#allocation7 + $0x1], 1 }
 0x201   :  { %628 = vsyncpa [#allocation10], 1 }
 0x202   :  { %630 = vsyncpa [#allocation10 + $0x1], 1 }
 0x203   :  { %631 = vsyncpa [#allocation5], 1 }
 0x204   :  { %633 = vsyncpa [#allocation5 + $0x1], 1 }

</bundles_post_ra>
